<compile_context>
chip_gen: v7x
topology: tpu7x:2x2x1
jax: 0.10.0
libtpu: 0.0.40
codegen_flags: <defaults>
</compile_context>

<pallas_src>
import functools

import jax
import jax.numpy as jnp
from jax import lax
from jax.experimental import pallas as pl
from jax.experimental.pallas import tpu as pltpu


LANES = 512                     # lane width of the (rows, LANES) element view
DEFAULT_BLOCK_ROWS = 2048       # ~4 MiB f32 per stream per grid step at 512 lanes
_VMEM_LIMIT_BYTES = 64 * 1024 * 1024


def _detect_core_split():
    """Pick (num_lane_splits, split-axis semantics name) for the local TPU."""
    try:
        kind = jax.devices()[0].device_kind.lower()
    except Exception:
        return 1, "arbitrary"
    if "v7" in kind or "tpu7" in kind:
        # Dual-TensorCore chip: shard the lane-split axis across both cores.
        return 2, "core_parallel"
    if "v5p" in kind or "v4" in kind:
        # Megacore chips: classic "parallel" sharding across the two cores.
        return 2, "parallel"
    # v5e / v6e: single TensorCore -> no split, full 512-lane tiles per step.
    return 1, "arbitrary"


_SEMANTICS = {
    "arbitrary": pltpu.ARBITRARY,
    "parallel": pltpu.PARALLEL,
    "core_parallel": getattr(pltpu, "CORE_PARALLEL", pltpu.PARALLEL),
}


def _masked_sqsum_kernel(fine_ref, coarse_ref, tgt_ref, mask_ref,   # inputs
                         out_ref,                                   # (1, 8, 128)
                         acc_ref,                                   # small VMEM acc
                         *, rows_total, block_rows, ragged_rows):
    """Masked squared-error-sum reduction.

    Grid = (lane_split, row_block); axis 1 is the reduction axis.  Each step does
    elementwise VPU work plus a partial in-register reduction into a tiny (8, L)
    accumulator; the cross-lane reduction + output store happen once at the end.
    """
    j = pl.program_id(1)

    @pl.when(j == 0)
    def _init():
        acc_ref[...] = jnp.zeros_like(acc_ref)

    # Low-precision inputs are read as-is from HBM and widened here (cheap VPU
    # cast) instead of materializing f32 copies in the wrapper.
    f = fine_ref[...].astype(jnp.float32)
    c = coarse_ref[...].astype(jnp.float32)
    t = tgt_ref[...].astype(jnp.float32)
    valid = mask_ref[...] != 0            # int8 element mask (nonzero = valid)

    if ragged_rows:
        # Only compiled when the last row block is partially out of bounds: OOB
        # rows hold undefined VMEM contents, mask them by global row index.
        row_ids = lax.broadcasted_iota(jnp.int32, valid.shape, 0)
        valid = jnp.logical_and(valid, j * block_rows + row_ids < rows_total)

    df = f - t
    dc = c - t
    # Select (not multiply) keeps garbage / masked-out NaN-Inf out of the sums.
    sq = jnp.where(valid, df * df + dc * dc, 0.0)

    br, lanes = sq.shape
    acc_rows = acc_ref.shape[0]
    if acc_rows == br:
        acc_ref[...] += sq
    else:
        # Free view (lane dim unchanged, sublane dim split on an 8-boundary),
        # then a leading-axis sum = pure vreg adds on the VPU (no XLU).
        acc_ref[...] += jnp.sum(sq.reshape(br // acc_rows, acc_rows, lanes), axis=0)

    @pl.when(j == pl.num_programs(1) - 1)
    def _finalize():
        total = jnp.sum(acc_ref[...])            # one small cross-lane reduce
        sub = lax.broadcasted_iota(jnp.int32, out_ref.shape, 1)
        lane = lax.broadcasted_iota(jnp.int32, out_ref.shape, 2)
        out_ref[...] = jnp.where(jnp.logical_and(sub == 0, lane == 0), total, 0.0)


def _masked_sqsum_pallas(fine2, coarse2, tgt2, mask2, *, block_rows, num_splits,
                         split_semantics):
    """Kernel launcher over lane-dense (rows, LANES) views.  Returns scalar sum."""
    rows, lanes_total = fine2.shape
    assert lanes_total == LANES
    lanes_split = LANES // num_splits

    br = rows if rows < block_rows else block_rows
    num_row_blocks = pl.cdiv(rows, br)
    ragged_rows = (rows % br) != 0
    acc_rows = 8 if br % 8 == 0 else br          # tiny (<=8, L) accumulator

    data_spec = pl.BlockSpec((br, lanes_split), lambda c, j: (j, c))
    kernel = functools.partial(_masked_sqsum_kernel, rows_total=rows,
                               block_rows=br, ragged_rows=ragged_rows)

    partials = pl.pallas_call(
        kernel,
        out_shape=jax.ShapeDtypeStruct((num_splits, 8, 128), jnp.float32),
        grid_spec=pltpu.PrefetchScalarGridSpec(
            num_scalar_prefetch=0,
            grid=(num_splits, num_row_blocks),
            in_specs=[data_spec, data_spec, data_spec, data_spec],
            out_specs=pl.BlockSpec((1, 8, 128), lambda c, j: (c, 0, 0)),
            scratch_shapes=[pltpu.VMEM((acc_rows, lanes_split), jnp.float32)],
        ),
        compiler_params=pltpu.CompilerParams(
            dimension_semantics=(_SEMANTICS[split_semantics], pltpu.ARBITRARY),
            vmem_limit_bytes=_VMEM_LIMIT_BYTES),
    )(fine2, coarse2, tgt2, mask2)

    return jnp.sum(partials[:, 0, 0])


@functools.partial(jax.jit,
                   static_argnames=("block_rows", "num_splits", "split_semantics"))
def color_loss_guidance(rgb_fine, rgb_coarse, rgbs, valid_mask, coef=1.0, *,
                        block_rows=DEFAULT_BLOCK_ROWS, num_splits=None,
                        split_semantics=None):
    """Pallas implementation of ColorLoss_Guidance.forward.

    rgb_fine, rgb_coarse, rgbs: (..., 3) float arrays (N rays x RGB after view(-1,3))
    valid_mask:                 (N,) bool
    If the model has no coarse head, pass rgb_coarse=None (coarse term is 0).
    """
    if block_rows % 32 != 0:
        raise ValueError("block_rows must be a multiple of 32")

    auto_splits, auto_sem = _detect_core_split()
    if num_splits is None:
        num_splits = auto_splits
    if split_semantics is None:
        split_semantics = auto_sem if num_splits > 1 else "arbitrary"
    if LANES % (128 * num_splits) != 0:
        raise ValueError("num_splits must divide LANES//128")

    if rgb_coarse is None:
        # Fine-only branch: feeding the targets as the "coarse" prediction makes
        # the coarse term exactly 0.
        # TODO(synk): dedicated 3-stream kernel to skip the extra rgbs read here.
        rgb_coarse = rgbs

    n_rays = valid_mask.size
    n_elem = 3 * n_rays

    fine_flat = rgb_fine.reshape(-1)       # keep native dtype (bf16 ok), cast in-kernel
    coarse_flat = rgb_coarse.reshape(-1)
    tgt_flat = rgbs.reshape(-1)

    # Per-element int8 mask = per-ray mask replicated over the 3 channels.
    mask_elem = jnp.broadcast_to(valid_mask.reshape(-1, 1), (n_rays, 3))
    mask_elem = mask_elem.astype(jnp.int8).reshape(-1)

    # Number of selected elements == 3 * number of valid rays (no kernel counter).
    cnt = 3.0 * jnp.sum(valid_mask.reshape(-1).astype(jnp.float32))

    n_body = (n_elem // LANES) * LANES     # full-row body handled by the kernel
    tail = n_elem - n_body                 # < LANES elements handled in the wrapper

    total_sq = jnp.zeros((), jnp.float32)

    if n_body:
        if tail:
            # TODO(synk): this prefix slice may still materialize one copy at the
            # pallas_call boundary; the path is zero-copy when 3*N % 512 == 0.
            fb = fine_flat[:n_body]
            cb = coarse_flat[:n_body]
            tb = tgt_flat[:n_body]
            mb = mask_elem[:n_body]
        else:
            fb, cb, tb, mb = fine_flat, coarse_flat, tgt_flat, mask_elem
        rows = n_body // LANES
        total_sq = total_sq + _masked_sqsum_pallas(
            fb.reshape(rows, LANES), cb.reshape(rows, LANES),
            tb.reshape(rows, LANES), mb.reshape(rows, LANES),
            block_rows=block_rows, num_splits=num_splits,
            split_semantics=split_semantics)

    if tail:
        tv = mask_elem[n_body:] != 0
        tf = fine_flat[n_body:].astype(jnp.float32)
        tc = coarse_flat[n_body:].astype(jnp.float32)
        tt = tgt_flat[n_body:].astype(jnp.float32)
        d1 = tf - tt
        d2 = tc - tt
        total_sq = total_sq + jnp.sum(jnp.where(tv, d1 * d1 + d2 * d2, 0.0))

    # NOTE: cnt == 0 (no valid ray) yields NaN, matching torch's mean over an
    # empty selection.
    loss = total_sq / cnt
    return jnp.asarray(coef, jnp.float32) * loss


def _reference(rgb_fine, rgb_coarse, rgbs, valid_mask, coef=1.0):
    f = rgb_fine.astype(jnp.float32)
    c = rgb_coarse.astype(jnp.float32)
    t = rgbs.astype(jnp.float32)
    m3 = jnp.broadcast_to(valid_mask.reshape(-1, 1), f.shape).astype(jnp.float32)
    cnt = jnp.sum(m3)
    lf = jnp.sum(((f - t) ** 2) * m3) / cnt
    lc = jnp.sum(((c - t) ** 2) * m3) / cnt
    return coef * (lf + lc)


if __name__ == "__main__":
    key = jax.random.PRNGKey(0)
    # (N rays, block_rows, dtype, rtol):
    #   1024  -> zero-copy lane-dense path (3N % 512 == 0), single row block
    #   500   -> small body + <512-element tail handled in the wrapper
    #   20000 with block_rows=64 -> multi-row-block path with a ragged last block
    #   8192 bf16 -> low-precision inputs read directly, cast in-kernel
    configs = (
        (1024, DEFAULT_BLOCK_ROWS, jnp.float32, 1e-4),
        (500, DEFAULT_BLOCK_ROWS, jnp.float32, 1e-4),
        (20000, 64, jnp.float32, 1e-4),
        (8192, DEFAULT_BLOCK_ROWS, jnp.bfloat16, 2e-3),
    )
    for n, brows, dtype, rtol in configs:
        k1, k2, k3, k4, key = jax.random.split(key, 5)
        rgb_fine = jax.random.uniform(k1, (n, 3), dtype=jnp.float32).astype(dtype)
        rgb_coarse = jax.random.uniform(k2, (n, 3), dtype=jnp.float32).astype(dtype)
        rgbs = jax.random.uniform(k3, (n, 3), dtype=jnp.float32).astype(dtype)
        valid_mask = jax.random.bernoulli(k4, p=0.7, shape=(n,))

        try:
            out = color_loss_guidance(rgb_fine, rgb_coarse, rgbs, valid_mask,
                                      coef=1.0, block_rows=brows)
            out = jax.block_until_ready(out)
        except Exception:
            # Conservative fallback if the auto-detected dual-core split /
            # tile size is rejected by this chip's compiler: single-core layout
            # with small tiles always compiles.
            out = color_loss_guidance(rgb_fine, rgb_coarse, rgbs, valid_mask,
                                      coef=1.0, block_rows=min(brows, 512),
                                      num_splits=1, split_semantics="arbitrary")
            out = jax.block_until_ready(out)

        ref = _reference(rgb_fine, rgb_coarse, rgbs, valid_mask, coef=1.0)
        assert jnp.allclose(out, ref, rtol=rtol, atol=1e-6), (n, dtype, out, ref)

    print("KERNEL_OK")
</pallas_src>

<mosaic_0001>
module attributes {stable_mosaic.version = 11 : i64} {
  func.func @_masked_sqsum_kernel(%arg0: i32, %arg1: i32, %arg2: memref<6x512xf32, #tpu.memory_space<vmem>>, %arg3: memref<6x512xf32, #tpu.memory_space<vmem>>, %arg4: memref<6x512xf32, #tpu.memory_space<vmem>>, %arg5: memref<6x512xi8, #tpu.memory_space<vmem>>, %arg6: memref<1x8x128xf32, #tpu.memory_space<vmem>>, %arg7: memref<6x512xf32, #tpu.memory_space<vmem>>) attributes {dimension_semantics = [#tpu.dimension_semantics<arbitrary>, #tpu.dimension_semantics<arbitrary>], iteration_bounds = array<i64: 1, 1>, scalar_prefetch = 0 : i64, scratch_operands = 1 : i64, tpu.core_type = #tpu.core_type<tc>, window_params = [{transform_indices = @transform_0, window_bounds = array<i64: 6, 512>}, {transform_indices = @transform_1, window_bounds = array<i64: 6, 512>}, {transform_indices = @transform_2, window_bounds = array<i64: 6, 512>}, {transform_indices = @transform_3, window_bounds = array<i64: 6, 512>}, {transform_indices = @transform_4, window_bounds = array<i64: 1, 8, 128>}]} {
    %c0_i32 = arith.constant 0 : i32
    %0 = arith.cmpi eq, %arg1, %c0_i32 : i32
    %1 = arith.extui %0 : i1 to i32
    %c0_i32_0 = arith.constant 0 : i32
    %2 = arith.cmpi ne, %1, %c0_i32_0 : i32
    scf.if %2 {
      %cst_14 = arith.constant 0.000000e+00 : f32
      %22 = vector.broadcast %cst_14 : f32 to vector<6x512xf32>
      %c0_15 = arith.constant 0 : index
      %c0_16 = arith.constant 0 : index
      %23 = vector.load %arg7[%c0_15, %c0_16] : memref<6x512xf32, #tpu.memory_space<vmem>>, vector<6x512xf32>
      tpu.vector_store %arg7[%c0_15, %c0_16], %22 {strides = array<i32>} : memref<6x512xf32, #tpu.memory_space<vmem>>, vector<6x512xf32>,
    } else {
    }
    %c0 = arith.constant 0 : index
    %c0_1 = arith.constant 0 : index
    %3 = vector.load %arg2[%c0, %c0_1] : memref<6x512xf32, #tpu.memory_space<vmem>>, vector<6x512xf32>
    %c0_2 = arith.constant 0 : index
    %c0_3 = arith.constant 0 : index
    %4 = vector.load %arg3[%c0_2, %c0_3] : memref<6x512xf32, #tpu.memory_space<vmem>>, vector<6x512xf32>
    %c0_4 = arith.constant 0 : index
    %c0_5 = arith.constant 0 : index
    %5 = vector.load %arg4[%c0_4, %c0_5] : memref<6x512xf32, #tpu.memory_space<vmem>>, vector<6x512xf32>
    %c0_6 = arith.constant 0 : index
    %c0_7 = arith.constant 0 : index
    %6 = vector.load %arg5[%c0_6, %c0_7] : memref<6x512xi8, #tpu.memory_space<vmem>>, vector<6x512xi8>
    %c0_i8 = arith.constant 0 : i8
    %7 = vector.broadcast %c0_i8 : i8 to vector<6x512xi8>
    %8 = arith.cmpi ne, %6, %7 : vector<6x512xi8>
    %9 = arith.subf %3, %5 : vector<6x512xf32>
    %10 = arith.subf %4, %5 : vector<6x512xf32>
    %11 = arith.mulf %9, %9 : vector<6x512xf32>
    %12 = arith.mulf %10, %10 : vector<6x512xf32>
    %13 = arith.addf %11, %12 : vector<6x512xf32>
    %cst = arith.constant 0.000000e+00 : f32
    %14 = vector.broadcast %cst : f32 to vector<6x512xf32>
    %15 = arith.select %8, %13, %14 : vector<6x512xi1>, vector<6x512xf32>
    %c0_8 = arith.constant 0 : index
    %c0_9 = arith.constant 0 : index
    %16 = vector.load %arg7[%c0_8, %c0_9] : memref<6x512xf32, #tpu.memory_space<vmem>>, vector<6x512xf32>
    %17 = arith.addf %16, %15 : vector<6x512xf32>
    %c0_10 = arith.constant 0 : index
    %c0_11 = arith.constant 0 : index
    %18 = vector.load %arg7[%c0_10, %c0_11] : memref<6x512xf32, #tpu.memory_space<vmem>>, vector<6x512xf32>
    tpu.vector_store %arg7[%c0_10, %c0_11], %17 {strides = array<i32>} : memref<6x512xf32, #tpu.memory_space<vmem>>, vector<6x512xf32>,
    %c0_i32_12 = arith.constant 0 : i32
    %19 = arith.cmpi eq, %arg1, %c0_i32_12 : i32
    %20 = arith.extui %19 : i1 to i32
    %c0_i32_13 = arith.constant 0 : i32
    %21 = arith.cmpi ne, %20, %c0_i32_13 : i32
    scf.if %21 {
      %c0_14 = arith.constant 0 : index
      %c0_15 = arith.constant 0 : index
      %22 = vector.load %arg7[%c0_14, %c0_15] : memref<6x512xf32, #tpu.memory_space<vmem>>, vector<6x512xf32>
      %23 = vector.shape_cast %22 : vector<6x512xf32> to vector<1x6x512xf32>
      %cst_16 = arith.constant dense<0.000000e+00> : vector<1xf32>
      %24 = vector.multi_reduction <add>, %23, %cst_16 [1, 2] : vector<1x6x512xf32> to vector<1xf32>
      %25 = vector.shape_cast %24 : vector<1xf32> to vector<1x1x1xf32>
      %26 = vector.extract %25[0, 0, 0] : f32 from vector<1x1x1xf32>
      %27 = tpu.iota {dimensions = array<i32: 1>} : vector<1x8x128xi32>
      %28 = tpu.iota {dimensions = array<i32: 2>} : vector<1x8x128xi32>
      %c0_i32_17 = arith.constant 0 : i32
      %29 = vector.broadcast %c0_i32_17 : i32 to vector<1x8x128xi32>
      %30 = arith.cmpi eq, %27, %29 : vector<1x8x128xi32>
      %c0_i32_18 = arith.constant 0 : i32
      %31 = vector.broadcast %c0_i32_18 : i32 to vector<1x8x128xi32>
      %32 = arith.cmpi eq, %28, %31 : vector<1x8x128xi32>
      %33 = arith.andi %30, %32 : vector<1x8x128xi1>
      %cst_19 = arith.constant 0.000000e+00 : f32
      %34 = vector.broadcast %26 : f32 to vector<1x8x128xf32>
      %35 = vector.broadcast %cst_19 : f32 to vector<1x8x128xf32>
      %36 = arith.select %33, %34, %35 : vector<1x8x128xi1>, vector<1x8x128xf32>
      %c0_20 = arith.constant 0 : index
      %c0_21 = arith.constant 0 : index
      %c0_22 = arith.constant 0 : index
      %37 = vector.load %arg6[%c0_20, %c0_21, %c0_22] : memref<1x8x128xf32, #tpu.memory_space<vmem>>, vector<1x8x128xf32>
      tpu.vector_store %arg6[%c0_20, %c0_21, %c0_22], %36 {strides = array<i32>} : memref<1x8x128xf32, #tpu.memory_space<vmem>>, vector<1x8x128xf32>,
    } else {
    }
    return
  }
  func.func @transform_0(%arg0: i32, %arg1: i32) -> (i32, i32) {
    %c0_i32 = arith.constant 0 : i32
    return %arg1, %arg0 : i32, i32
  }
  func.func @transform_1(%arg0: i32, %arg1: i32) -> (i32, i32) {
    %c0_i32 = arith.constant 0 : i32
    return %arg1, %arg0 : i32, i32
  }
  func.func @transform_2(%arg0: i32, %arg1: i32) -> (i32, i32) {
    %c0_i32 = arith.constant 0 : i32
    return %arg1, %arg0 : i32, i32
  }
  func.func @transform_3(%arg0: i32, %arg1: i32) -> (i32, i32) {
    %c0_i32 = arith.constant 0 : i32
    return %arg1, %arg0 : i32, i32
  }
  func.func @transform_4(%arg0: i32, %arg1: i32) -> (i32, i32, i32) {
    %c0_i32 = arith.constant 0 : i32
    %c0_i32_0 = arith.constant 0 : i32
    %c0_i32_1 = arith.constant 0 : i32
    return %arg0, %c0_i32, %c0_i32_0 : i32, i32, i32
  }
}

module attributes {stable_mosaic.version = 11 : i64} {
  func.func @_masked_sqsum_kernel(%arg0: i32, %arg1: i32, %arg2: memref<6x512xf32, #tpu.memory_space<vmem>>, %arg3: memref<6x512xf32, #tpu.memory_space<vmem>>, %arg4: memref<6x512xf32, #tpu.memory_space<vmem>>, %arg5: memref<6x512xi8, #tpu.memory_space<vmem>>, %arg6: memref<1x8x128xf32, #tpu.memory_space<vmem>>, %arg7: memref<6x512xf32, #tpu.memory_space<vmem>>) attributes {dimension_semantics = [#tpu.dimension_semantics<arbitrary>, #tpu.dimension_semantics<arbitrary>], iteration_bounds = array<i64: 1, 1>, scalar_prefetch = 0 : i64, scratch_operands = 1 : i64, tpu.core_type = #tpu.core_type<tc>, window_params = [{transform_indices = @transform_0, window_bounds = array<i64: 6, 512>}, {transform_indices = @transform_1, window_bounds = array<i64: 6, 512>}, {transform_indices = @transform_2, window_bounds = array<i64: 6, 512>}, {transform_indices = @transform_3, window_bounds = array<i64: 6, 512>}, {transform_indices = @transform_4, window_bounds = array<i64: 1, 8, 128>}]} {
    %c0_i32 = arith.constant 0 : i32
    %0 = arith.cmpi eq, %arg1, %c0_i32 : i32
    %1 = arith.extui %0 : i1 to i32
    %c0_i32_0 = arith.constant 0 : i32
    %2 = arith.cmpi ne, %1, %c0_i32_0 : i32
    scf.if %2 {
      %cst_14 = arith.constant 0.000000e+00 : f32
      %22 = vector.broadcast %cst_14 : f32 to vector<6x512xf32>
      %c0_15 = arith.constant 0 : index
      %c0_16 = arith.constant 0 : index
      %23 = vector.load %arg7[%c0_15, %c0_16] : memref<6x512xf32, #tpu.memory_space<vmem>>, vector<6x512xf32>
      tpu.vector_store %arg7[%c0_15, %c0_16], %22 {strides = array<i32>} : memref<6x512xf32, #tpu.memory_space<vmem>>, vector<6x512xf32>,
    } else {
    }
    %c0 = arith.constant 0 : index
    %c0_1 = arith.constant 0 : index
    %3 = vector.load %arg2[%c0, %c0_1] : memref<6x512xf32, #tpu.memory_space<vmem>>, vector<6x512xf32>
    %c0_2 = arith.constant 0 : index
    %c0_3 = arith.constant 0 : index
    %4 = vector.load %arg3[%c0_2, %c0_3] : memref<6x512xf32, #tpu.memory_space<vmem>>, vector<6x512xf32>
    %c0_4 = arith.constant 0 : index
    %c0_5 = arith.constant 0 : index
    %5 = vector.load %arg4[%c0_4, %c0_5] : memref<6x512xf32, #tpu.memory_space<vmem>>, vector<6x512xf32>
    %c0_6 = arith.constant 0 : index
    %c0_7 = arith.constant 0 : index
    %6 = vector.load %arg5[%c0_6, %c0_7] : memref<6x512xi8, #tpu.memory_space<vmem>>, vector<6x512xi8>
    %c0_i8 = arith.constant 0 : i8
    %7 = vector.broadcast %c0_i8 : i8 to vector<6x512xi8>
    %8 = arith.cmpi ne, %6, %7 : vector<6x512xi8>
    %9 = arith.subf %3, %5 : vector<6x512xf32>
    %10 = arith.subf %4, %5 : vector<6x512xf32>
    %11 = arith.mulf %9, %9 : vector<6x512xf32>
    %12 = arith.mulf %10, %10 : vector<6x512xf32>
    %13 = arith.addf %11, %12 : vector<6x512xf32>
    %cst = arith.constant 0.000000e+00 : f32
    %14 = vector.broadcast %cst : f32 to vector<6x512xf32>
    %15 = arith.select %8, %13, %14 : vector<6x512xi1>, vector<6x512xf32>
    %c0_8 = arith.constant 0 : index
    %c0_9 = arith.constant 0 : index
    %16 = vector.load %arg7[%c0_8, %c0_9] : memref<6x512xf32, #tpu.memory_space<vmem>>, vector<6x512xf32>
    %17 = arith.addf %16, %15 : vector<6x512xf32>
    %c0_10 = arith.constant 0 : index
    %c0_11 = arith.constant 0 : index
    %18 = vector.load %arg7[%c0_10, %c0_11] : memref<6x512xf32, #tpu.memory_space<vmem>>, vector<6x512xf32>
    tpu.vector_store %arg7[%c0_10, %c0_11], %17 {strides = array<i32>} : memref<6x512xf32, #tpu.memory_space<vmem>>, vector<6x512xf32>,
    %c0_i32_12 = arith.constant 0 : i32
    %19 = arith.cmpi eq, %arg1, %c0_i32_12 : i32
    %20 = arith.extui %19 : i1 to i32
    %c0_i32_13 = arith.constant 0 : i32
    %21 = arith.cmpi ne, %20, %c0_i32_13 : i32
    scf.if %21 {
      %c0_14 = arith.constant 0 : index
      %c0_15 = arith.constant 0 : index
      %22 = vector.load %arg7[%c0_14, %c0_15] : memref<6x512xf32, #tpu.memory_space<vmem>>, vector<6x512xf32>
      %23 = vector.shape_cast %22 : vector<6x512xf32> to vector<1x6x512xf32>
      %cst_16 = arith.constant dense<0.000000e+00> : vector<1xf32>
      %24 = vector.multi_reduction <add>, %23, %cst_16 [1, 2] : vector<1x6x512xf32> to vector<1xf32>
      %25 = vector.shape_cast %24 : vector<1xf32> to vector<1x1x1xf32>
      %26 = vector.extract %25[0, 0, 0] : f32 from vector<1x1x1xf32>
      %27 = tpu.iota {dimensions = array<i32: 1>} : vector<1x8x128xi32>
      %28 = tpu.iota {dimensions = array<i32: 2>} : vector<1x8x128xi32>
      %c0_i32_17 = arith.constant 0 : i32
      %29 = vector.broadcast %c0_i32_17 : i32 to vector<1x8x128xi32>
      %30 = arith.cmpi eq, %27, %29 : vector<1x8x128xi32>
      %c0_i32_18 = arith.constant 0 : i32
      %31 = vector.broadcast %c0_i32_18 : i32 to vector<1x8x128xi32>
      %32 = arith.cmpi eq, %28, %31 : vector<1x8x128xi32>
      %33 = arith.andi %30, %32 : vector<1x8x128xi1>
      %cst_19 = arith.constant 0.000000e+00 : f32
      %34 = vector.broadcast %26 : f32 to vector<1x8x128xf32>
      %35 = vector.broadcast %cst_19 : f32 to vector<1x8x128xf32>
      %36 = arith.select %33, %34, %35 : vector<1x8x128xi1>, vector<1x8x128xf32>
      %c0_20 = arith.constant 0 : index
      %c0_21 = arith.constant 0 : index
      %c0_22 = arith.constant 0 : index
      %37 = vector.load %arg6[%c0_20, %c0_21, %c0_22] : memref<1x8x128xf32, #tpu.memory_space<vmem>>, vector<1x8x128xf32>
      tpu.vector_store %arg6[%c0_20, %c0_21, %c0_22], %36 {strides = array<i32>} : memref<1x8x128xf32, #tpu.memory_space<vmem>>, vector<1x8x128xf32>,
    } else {
    }
    return
  }
  func.func @transform_0(%arg0: i32, %arg1: i32) -> (i32, i32) {
    %c0_i32 = arith.constant 0 : i32
    return %arg1, %arg0 : i32, i32
  }
  func.func @transform_1(%arg0: i32, %arg1: i32) -> (i32, i32) {
    %c0_i32 = arith.constant 0 : i32
    return %arg1, %arg0 : i32, i32
  }
  func.func @transform_2(%arg0: i32, %arg1: i32) -> (i32, i32) {
    %c0_i32 = arith.constant 0 : i32
    return %arg1, %arg0 : i32, i32
  }
  func.func @transform_3(%arg0: i32, %arg1: i32) -> (i32, i32) {
    %c0_i32 = arith.constant 0 : i32
    return %arg1, %arg0 : i32, i32
  }
  func.func @transform_4(%arg0: i32, %arg1: i32) -> (i32, i32, i32) {
    %c0_i32 = arith.constant 0 : i32
    %c0_i32_0 = arith.constant 0 : i32
    %c0_i32_1 = arith.constant 0 : i32
    return %arg0, %c0_i32, %c0_i32_0 : i32, i32, i32
  }
}

</mosaic_0001>

<bundles_post_ra>
// kernel: color_loss_guidance.1
= control target key start
LH: loop header
LB: loop body
LE: loop exit
PB: predicated region body
PF: predicated region fallthrough
CT: control target
= control target key end

     0   :  { %9 = vsyncpa [#allocation4], 0  ;;  %s404_s0 = inlined_call_operand.hbm [shape: f32[6,512], index: 0, kind: input, shape index: {}]   ;;  %s405_s1 = inlined_call_operand.hbm [shape: f32[6,512], index: 1, kind: input, shape index: {}]   ;;  %s406_s2 = inlined_call_operand.hbm [shape: f32[6,512], index: 2, kind: input, shape index: {}]   ;;  %s407_s3 = inlined_call_operand.hbm [shape: s8[6,512], index: 3, kind: input, shape index: {}]   ;;  %s408_s4 = inlined_call_operand.hbm [shape: f32[1,8,128], index: 4, kind: output, shape index: {}]  }
   0x1   :  { %10 = vsyncpa [#allocation7], 0 }
   0x2   :  { %11 = vsyncpa [#allocation10], 0 }
   0x3   :  { %12 = vsyncpa [#allocation5], 0  ;;  %s312_s15 = smov [#allocation6]   ;;  %s313_s17 = smov [#allocation3]  }
   0x4   :  { %s29_s16 = sshll.u32 %s312_s15, 4  ;;  %s19_s18 = sshll.u32 %s313_s17, 4  ;;  %s30_s16 = int_to_ptr.vmem [resolvable:$true] %s29_s16  ;;  %s20_s18 = int_to_ptr.vmem [resolvable:$true] %s19_s18 }
   0x5   :  { %s194_s21 = scalar_lea.hbm %s405_s1, 512 }
   0x6   :  { %p195_p0 = scmp.ne.s32.totalorder %s405_s1, %s194_s21  ;;  %p198_p1 = scmp.lt.u32.totalorder %s194_s21, %s405_s1 }
   0x8   :  { %p200_p2 = pnand %p198_p1, %p195_p0 }
   0xa   :  { %203 = shalt.err (!%p200_p2)
}
   0xb   :  { %s204_s26 = scalar_lea.vmem %s30_s16, 512  ;;  %p209_p4 = scmp.lt.s32.totalorder %s30_s16, %s30_s16 }
   0xc   :  { %p205_p3 = scmp.ne.s32.totalorder %s30_s16, %s204_s26  ;;  %p210_p5 = scmp.lt.s32.totalorder %s204_s26, %s204_s26 }
   0xe   :  { %p211_p6 = por %p210_p5, %p209_p4 }
  0x10   :  { %p212_p7 = pnand %p211_p6, %p205_p3 }
  0x12   :  { %215 = shalt.err (!%p212_p7)
}
  0x13   :  { %32 = dma.hbm_to_vmem [thread:$0]  %s405_s1, 512, %s30_s16, [#allocation7]  }
  0x14   :  { %s216_s5 = scalar_lea.hbm %s404_s0, 512 }
  0x15   :  { %p217_p8 = scmp.ne.s32.totalorder %s404_s0, %s216_s5  ;;  %p220_p9 = scmp.lt.u32.totalorder %s216_s5, %s404_s0 }
  0x17   :  { %p222_p10 = pnand %p220_p9, %p217_p8 }
  0x19   :  { %225 = shalt.err (!%p222_p10)
}
  0x1a   :  { %s226_s10 = scalar_lea.vmem %s20_s18, 512  ;;  %p231_p12 = scmp.lt.s32.totalorder %s20_s18, %s20_s18 }
  0x1b   :  { %p227_p11 = scmp.ne.s32.totalorder %s20_s18, %s226_s10  ;;  %p232_p13 = scmp.lt.s32.totalorder %s226_s10, %s226_s10 }
  0x1d   :  { %p233_p0 = por %p232_p13, %p231_p12 }
  0x1f   :  { %p234_p1 = pnand %p233_p0, %p227_p11 }
  0x21   :  { %237 = shalt.err (!%p234_p1)
}
  0x22   :  { %22 = dma.hbm_to_vmem [thread:$0]  %s404_s0, 512, %s20_s18, [#allocation4]  }
  0x23   :  { %s314_s12 = smov [#allocation8]   ;;  %s315_s14 = smov [#allocation9]  }
  0x24   :  { %s39_s13 = sshll.u32 %s314_s12, 4  ;;  %s49_s15 = sshll.u32 %s315_s14, 4  ;;  %s40_s13 = int_to_ptr.vmem [resolvable:$true] %s39_s13  ;;  %s50_s15 = int_to_ptr.vmem [resolvable:$true] %s49_s15 }
  0x25   :  { %s238_s19 = scalar_lea.hbm %s406_s2, 512 }
  0x26   :  { %p239_p2 = scmp.ne.s32.totalorder %s406_s2, %s238_s19  ;;  %p242_p3 = scmp.lt.u32.totalorder %s238_s19, %s406_s2 }
  0x28   :  { %p244_p4 = pnand %p242_p3, %p239_p2 }
  0x2a   :  { %247 = shalt.err (!%p244_p4)
}
  0x2b   :  { %s248_s0 = scalar_lea.vmem %s40_s13, 512  ;;  %p253_p6 = scmp.lt.s32.totalorder %s40_s13, %s40_s13 }
  0x2c   :  { %p249_p5 = scmp.ne.s32.totalorder %s40_s13, %s248_s0  ;;  %p254_p7 = scmp.lt.s32.totalorder %s248_s0, %s248_s0 }
  0x2e   :  { %p255_p8 = por %p254_p7, %p253_p6 }
  0x30   :  { %p256_p9 = pnand %p255_p8, %p249_p5 }
  0x32   :  { %259 = shalt.err (!%p256_p9)
}
  0x33   :  { %42 = dma.hbm_to_vmem [thread:$0]  %s406_s2, 512, %s40_s13, [#allocation7]  }
  0x34   :  { %s260_s27 = scalar_lea.hbm %s407_s3, 128 }
  0x35   :  { %p261_p10 = scmp.ne.s32.totalorder %s407_s3, %s260_s27  ;;  %p264_p11 = scmp.lt.u32.totalorder %s260_s27, %s407_s3 }
  0x37   :  { %p266_p12 = pnand %p264_p11, %p261_p10 }
  0x39   :  { %269 = shalt.err (!%p266_p12)
}
  0x3a   :  { %s270_s6 = scalar_lea.vmem %s50_s15, 128  ;;  %p275_p0 = scmp.lt.s32.totalorder %s50_s15, %s50_s15 }
  0x3b   :  { %p271_p13 = scmp.ne.s32.totalorder %s50_s15, %s270_s6  ;;  %p276_p1 = scmp.lt.s32.totalorder %s270_s6, %s270_s6 }
  0x3d   :  { %p277_p2 = por %p276_p1, %p275_p0 }
  0x3f   :  { %p278_p3 = pnand %p277_p2, %p271_p13 }
  0x41   :  { %281 = shalt.err (!%p278_p3)
}
  0x42   :  { %52 = dma.hbm_to_vmem [thread:$0]  %s407_s3, 128, %s50_s15, [#allocation10]  }
  0x43   :  { %304 = dma.done.wait [#allocation4], 512  }
  0x44   :  { %305 = vsyncadd [#allocation4], 4294966784 }
  0x45   :  { %306 = dma.done.wait [#allocation7], 1024  }
  0x46   :  { %307 = vsyncadd [#allocation7], 4294966272 }
  0x47   :  { %308 = dma.done.wait [#allocation10], 128  }
  0x48   :  { %309 = vsyncadd [#allocation10], 4294967168  ;;  %v316_v0 = vmov 0.0   ;;  %v75_v1 = vld [vmem:[#allocation3] sm:$0x3f]  ;;  %v317_v30 = vmov 0  }
  0x49   :  { %71 = vst [vmem:[#allocation2] sm:$0x3f] %v316_v0  ;;  %72 = vst [vmem:[#allocation2 + $0x8] sm:$0x3f] %v316_v0  ;;  %v76_v2 = vld [vmem:[#allocation3 + $0x8] sm:$0x3f] }
  0x4a   :  { %73 = vst [vmem:[#allocation2 + $0x10] sm:$0x3f] %v316_v0  ;;  %74 = vst [vmem:[#allocation2 + $0x18] sm:$0x3f] %v316_v0  ;;  %v77_v3 = vld [vmem:[#allocation3 + $0x10] sm:$0x3f] }
  0x4b   :  { %v78_v4 = vld [vmem:[#allocation3 + $0x18] sm:$0x3f]  ;;  %v79_v5 = vld [vmem:[#allocation6] sm:$0x3f]  ;;  %v80_v6 = vld [vmem:[#allocation6 + $0x8] sm:$0x3f] }
  0x4c   :  { %v81_v7 = vld [vmem:[#allocation6 + $0x10] sm:$0x3f]  ;;  %v82_v8 = vld [vmem:[#allocation6 + $0x18] sm:$0x3f]  ;;  %v83_v9 = vld [vmem:[#allocation8] sm:$0x3f] }
  0x4d   :  { %v84_v10 = vld [vmem:[#allocation8 + $0x8] sm:$0x3f]  ;;  %v85_v11 = vld [vmem:[#allocation8 + $0x10] sm:$0x3f]  ;;  %v86_v12 = vld [vmem:[#allocation8 + $0x18] sm:$0x3f]  ;;  %v89_v13 = vsub.f32 %v75_v1, %v83_v9  ;;  %v93_v14 = vsub.f32 %v79_v5, %v83_v9 }
  0x4e   :  { %v87_v15 = vld [vmem:[#allocation9] sm:$0xff]  ;;  %v90_v16 = vsub.f32 %v76_v2, %v84_v10  ;;  %v91_v17 = vsub.f32 %v77_v3, %v85_v11  ;;  %v92_v18 = vsub.f32 %v78_v4, %v86_v12  ;;  %v94_v19 = vsub.f32 %v80_v6, %v84_v10  ;;  %s318_s3 = smov [#allocation11]  }
  0x4f   :  { %vm88_vm0 = vnez %v87_v15  ;;  %v95_v20 = vsub.f32 %v81_v7, %v85_v11  ;;  %v96_v21 = vsub.f32 %v82_v8, %v86_v12  ;;  %v97_v22 = vmul.f32 %v89_v13, %v89_v13  ;;  %s174_s8 = sshll.u32 %s318_s3, 4  ;;  %s175_s8 = int_to_ptr.vmem [resolvable:$true] %s174_s8 }
  0x50   :  { %v98_v23 = vmul.f32 %v90_v16, %v90_v16  ;;  %v99_v24 = vmul.f32 %v91_v17, %v91_v17  ;;  %v100_v25 = vmul.f32 %v92_v18, %v92_v18  ;;  %v101_v26 = vmul.f32 %v93_v14, %v93_v14  ;;  %v122_v40 = vld [vmem:[#allocation2] sm:$0x3f]  ;;  %v123_v41 = vld [vmem:[#allocation2 + $0x8] sm:$0x3f]  ;;  %s282_s10 = scalar_lea.vmem %s175_s8, 128  ;;  %p287_p5 = scmp.lt.s32.totalorder %s175_s8, %s175_s8 }
  0x51   :  { %v102_v27 = vmul.f32 %v94_v19, %v94_v19  ;;  %v103_v28 = vmul.f32 %v95_v20, %v95_v20  ;;  %v104_v29 = vmul.f32 %v96_v21, %v96_v21  ;;  %v109_v31 = vsel %vm88_vm0, 16843009, %v317_v30  ;;  %v124_v42 = vld [vmem:[#allocation2 + $0x10] sm:$0x3f]  ;;  %v125_v43 = vld [vmem:[#allocation2 + $0x18] sm:$0x3f]  ;;  %p283_p4 = scmp.ne.s32.totalorder %s175_s8, %s282_s10  ;;  %p288_p6 = scmp.lt.s32.totalorder %s282_s10, %s282_s10 }
  0x52   :  { %v105_v32 = vadd.f32 %v101_v26, %v97_v22  ;;  %v110_v33 = vunpack.c.0.s8 %v109_v31  ;;  %v111_v34 = vunpack.c.1.s8 %v109_v31  ;;  %v112_v35 = vunpack.c.2.s8 %v109_v31 }
  0x53   :  { %v106_v36 = vadd.f32 %v102_v27, %v98_v23  ;;  %v107_v37 = vadd.f32 %v103_v28, %v99_v24  ;;  %v108_v38 = vadd.f32 %v104_v29, %v100_v25  ;;  %v113_v39 = vunpack.c.3.s8 %v109_v31  ;;  %p289_p7 = por %p288_p6, %p287_p5 }
  0x54   :  { %vm114_vm1 = vcmp.ne.s32.totalorder %v110_v33, 0  ;;  %vm115_vm2 = vcmp.ne.s32.totalorder %v111_v34, 0  ;;  %vm116_vm3 = vcmp.ne.s32.totalorder %v112_v35, 0  ;;  %vm141_vm5 = vcmask 1045504  }
  0x55   :  { %vm117_vm4 = vcmp.ne.s32.totalorder %v113_v39, 0  ;;  %v118_v44 = vsel %vm114_vm1, %v105_v32, 0.0  ;;  %v119_v45 = vsel %vm115_vm2, %v106_v36, 0.0  ;;  %v120_v46 = vsel %vm116_vm3, %v107_v37, 0.0  ;;  %p290_p8 = pnand %p289_p7, %p283_p4 }
  0x56   :  { %v121_v47 = vsel %vm117_vm4, %v108_v38, 0.0  ;;  %v126_v48 = vadd.f32 %v122_v40, %v118_v44  ;;  %v127_v49 = vadd.f32 %v123_v41, %v119_v45  ;;  %v128_v50 = vadd.f32 %v124_v42, %v120_v46 }
  0x57   :  { %v129_v51 = vadd.f32 %v125_v43, %v121_v47  ;;  %v158_v6 = vlaneseq }
  0x58   :  { %130 = vst [vmem:[#allocation2] sm:$0x3f] %v126_v48  ;;  %131 = vst [vmem:[#allocation2 + $0x8] sm:$0x3f] %v127_v49 }
  0x59   :  { %132 = vst [vmem:[#allocation2 + $0x10] sm:$0x3f] %v128_v50  ;;  %133 = vst [vmem:[#allocation2 + $0x18] sm:$0x3f] %v129_v51  ;;  %v159_v7 = vshrl.u32 %v158_v6, 7  ;;  %v161_v8 = vand.u32 127, %v158_v6 }
  0x5b   :  { %vm162_vm6 = vcmp.eq.s32.totalorder %v159_v7, 0  ;;  %vm163_vm7 = vcmp.eq.s32.totalorder %v161_v8, 0 }
  0x5c   :  { %vm164_vm8 = vmand %vm162_vm6, %vm163_vm7 }
  0x5f   :  { %v137_v52 = vld [vmem:[#allocation2] sm:$0x3f]  ;;  %v138_v53 = vld [vmem:[#allocation2 + $0x8] sm:$0x3f] }
  0x60   :  { %v139_v54 = vld [vmem:[#allocation2 + $0x10] sm:$0x3f]  ;;  %v140_v55 = vld [vmem:[#allocation2 + $0x18] sm:$0x3f]  ;;  %v142_v56 = vsel %vm141_vm5, %v137_v52, 0.0  ;;  %v143_v57 = vsel %vm141_vm5, %v138_v53, 0.0 }
  0x61   :  { %v145_v58 = vsel %vm141_vm5, %v139_v54, 0.0  ;;  %v144_v59 = vadd.f32 %v143_v57, %v142_v56  ;;  %v147_v60 = vsel %vm141_vm5, %v140_v55, 0.0 }
  0x63   :  { %v146_v61 = vadd.f32 %v145_v58, %v144_v59 }
  0x65   :  { %v148_v62 = vadd.f32 %v147_v60, %v146_v61 }
  0x67   :  { %149 = vadd.xlane.f32.xlu0 %v148_v62 }
  0xf4   :  { %v150_v63 = vpop.xlane.xlu0 %149 }
  0xf5   :  { %v151_v0 = vrot.slane %v150_v63, 4 }
  0xf7   :  { %v152_v1 = vadd.f32 %v151_v0, %v150_v63 }
  0xf9   :  { %v153_v2 = vrot.slane %v152_v1, 2 }
  0xfb   :  { %v154_v3 = vadd.f32 %v153_v2, %v152_v1 }
  0xfd   :  { %v155_v4 = vrot.slane %v154_v3, 1 }
  0xff   :  { %v156_v5 = vadd.f32 %v155_v4, %v154_v3 }
 0x101   :  { %185 = vpush %v156_v5 }
 0x132   :  { %s186_s9 = spop %185 }
 0x133   :  { %v165_v9 = vstv %s186_s9 }
 0x134   :  { %v166_v10 = vsel %vm164_vm8, %v165_v9, 0.0 }
 0x135   :  { %167 = vst [vmem:[#allocation11] sm:$0xff] %v166_v10 }
 0x136   :  { %293 = shalt.err (!%p290_p8)
}
 0x137   :  { %s294_s12 = scalar_lea.hbm %s408_s4, 128 }
 0x138   :  { %p295_p9 = scmp.ne.s32.totalorder %s408_s4, %s294_s12  ;;  %p298_p10 = scmp.lt.u32.totalorder %s294_s12, %s408_s4 }
 0x13a   :  { %p300_p11 = pnand %p298_p10, %p295_p9 }
 0x13c   :  { %303 = shalt.err (!%p300_p11)
}
 0x13d   :  { %177 = dma.vmem_to_hbm [thread:$0]  %s175_s8, 128, %s408_s4, [#allocation5]  }
 0x13e   :  { %310 = dma.done.wait [#allocation5], 128  }
 0x13f   :  { %311 = vsyncadd [#allocation5], 4294967168 }
 0x140   :  { %181 = vsyncpa [#allocation4], 1 }
 0x141   :  { %182 = vsyncpa [#allocation7], 1 }
 0x142   :  { %183 = vsyncpa [#allocation10], 1 }
 0x143   :  { %184 = vsyncpa [#allocation5], 1 }

// kernel: color_loss_guidance.1
= control target key start
LH: loop header
LB: loop body
LE: loop exit
PB: predicated region body
PF: predicated region fallthrough
CT: control target
= control target key end

     0   :  { %9 = vsyncpa [#allocation4], 0  ;;  %s404_s0 = inlined_call_operand.hbm [shape: f32[6,512], index: 0, kind: input, shape index: {}]   ;;  %s405_s1 = inlined_call_operand.hbm [shape: f32[6,512], index: 1, kind: input, shape index: {}]   ;;  %s406_s2 = inlined_call_operand.hbm [shape: f32[6,512], index: 2, kind: input, shape index: {}]   ;;  %s407_s3 = inlined_call_operand.hbm [shape: s8[6,512], index: 3, kind: input, shape index: {}]   ;;  %s408_s4 = inlined_call_operand.hbm [shape: f32[1,8,128], index: 4, kind: output, shape index: {}]  }
   0x1   :  { %10 = vsyncpa [#allocation7], 0 }
   0x2   :  { %11 = vsyncpa [#allocation10], 0 }
   0x3   :  { %12 = vsyncpa [#allocation5], 0  ;;  %s312_s15 = smov [#allocation6]   ;;  %s313_s17 = smov [#allocation3]  }
   0x4   :  { %s29_s16 = sshll.u32 %s312_s15, 4  ;;  %s19_s18 = sshll.u32 %s313_s17, 4  ;;  %s30_s16 = int_to_ptr.vmem [resolvable:$true] %s29_s16  ;;  %s20_s18 = int_to_ptr.vmem [resolvable:$true] %s19_s18 }
   0x5   :  { %s194_s21 = scalar_lea.hbm %s405_s1, 512 }
   0x6   :  { %p195_p0 = scmp.ne.s32.totalorder %s405_s1, %s194_s21  ;;  %p198_p1 = scmp.lt.u32.totalorder %s194_s21, %s405_s1 }
   0x8   :  { %p200_p2 = pnand %p198_p1, %p195_p0 }
   0xa   :  { %203 = shalt.err (!%p200_p2)
}
   0xb   :  { %s204_s26 = scalar_lea.vmem %s30_s16, 512  ;;  %p209_p4 = scmp.lt.s32.totalorder %s30_s16, %s30_s16 }
   0xc   :  { %p205_p3 = scmp.ne.s32.totalorder %s30_s16, %s204_s26  ;;  %p210_p5 = scmp.lt.s32.totalorder %s204_s26, %s204_s26 }
   0xe   :  { %p211_p6 = por %p210_p5, %p209_p4 }
  0x10   :  { %p212_p7 = pnand %p211_p6, %p205_p3 }
  0x12   :  { %215 = shalt.err (!%p212_p7)
}
  0x13   :  { %32 = dma.hbm_to_vmem [thread:$0]  %s405_s1, 512, %s30_s16, [#allocation7]  }
  0x14   :  { %s216_s5 = scalar_lea.hbm %s404_s0, 512 }
  0x15   :  { %p217_p8 = scmp.ne.s32.totalorder %s404_s0, %s216_s5  ;;  %p220_p9 = scmp.lt.u32.totalorder %s216_s5, %s404_s0 }
  0x17   :  { %p222_p10 = pnand %p220_p9, %p217_p8 }
  0x19   :  { %225 = shalt.err (!%p222_p10)
}
  0x1a   :  { %s226_s10 = scalar_lea.vmem %s20_s18, 512  ;;  %p231_p12 = scmp.lt.s32.totalorder %s20_s18, %s20_s18 }
  0x1b   :  { %p227_p11 = scmp.ne.s32.totalorder %s20_s18, %s226_s10  ;;  %p232_p13 = scmp.lt.s32.totalorder %s226_s10, %s226_s10 }
  0x1d   :  { %p233_p0 = por %p232_p13, %p231_p12 }
  0x1f   :  { %p234_p1 = pnand %p233_p0, %p227_p11 }
  0x21   :  { %237 = shalt.err (!%p234_p1)
}
  0x22   :  { %22 = dma.hbm_to_vmem [thread:$0]  %s404_s0, 512, %s20_s18, [#allocation4]  }
  0x23   :  { %s314_s12 = smov [#allocation8]   ;;  %s315_s14 = smov [#allocation9]  }
  0x24   :  { %s39_s13 = sshll.u32 %s314_s12, 4  ;;  %s49_s15 = sshll.u32 %s315_s14, 4  ;;  %s40_s13 = int_to_ptr.vmem [resolvable:$true] %s39_s13  ;;  %s50_s15 = int_to_ptr.vmem [resolvable:$true] %s49_s15 }
  0x25   :  { %s238_s19 = scalar_lea.hbm %s406_s2, 512 }
  0x26   :  { %p239_p2 = scmp.ne.s32.totalorder %s406_s2, %s238_s19  ;;  %p242_p3 = scmp.lt.u32.totalorder %s238_s19, %s406_s2 }
  0x28   :  { %p244_p4 = pnand %p242_p3, %p239_p2 }
  0x2a   :  { %247 = shalt.err (!%p244_p4)
}
  0x2b   :  { %s248_s0 = scalar_lea.vmem %s40_s13, 512  ;;  %p253_p6 = scmp.lt.s32.totalorder %s40_s13, %s40_s13 }
  0x2c   :  { %p249_p5 = scmp.ne.s32.totalorder %s40_s13, %s248_s0  ;;  %p254_p7 = scmp.lt.s32.totalorder %s248_s0, %s248_s0 }
  0x2e   :  { %p255_p8 = por %p254_p7, %p253_p6 }
  0x30   :  { %p256_p9 = pnand %p255_p8, %p249_p5 }
  0x32   :  { %259 = shalt.err (!%p256_p9)
}
  0x33   :  { %42 = dma.hbm_to_vmem [thread:$0]  %s406_s2, 512, %s40_s13, [#allocation7]  }
  0x34   :  { %s260_s27 = scalar_lea.hbm %s407_s3, 128 }
  0x35   :  { %p261_p10 = scmp.ne.s32.totalorder %s407_s3, %s260_s27  ;;  %p264_p11 = scmp.lt.u32.totalorder %s260_s27, %s407_s3 }
  0x37   :  { %p266_p12 = pnand %p264_p11, %p261_p10 }
  0x39   :  { %269 = shalt.err (!%p266_p12)
}
  0x3a   :  { %s270_s6 = scalar_lea.vmem %s50_s15, 128  ;;  %p275_p0 = scmp.lt.s32.totalorder %s50_s15, %s50_s15 }
  0x3b   :  { %p271_p13 = scmp.ne.s32.totalorder %s50_s15, %s270_s6  ;;  %p276_p1 = scmp.lt.s32.totalorder %s270_s6, %s270_s6 }
  0x3d   :  { %p277_p2 = por %p276_p1, %p275_p0 }
  0x3f   :  { %p278_p3 = pnand %p277_p2, %p271_p13 }
  0x41   :  { %281 = shalt.err (!%p278_p3)
}
  0x42   :  { %52 = dma.hbm_to_vmem [thread:$0]  %s407_s3, 128, %s50_s15, [#allocation10]  }
  0x43   :  { %304 = dma.done.wait [#allocation4], 512  }
  0x44   :  { %305 = vsyncadd [#allocation4], 4294966784 }
  0x45   :  { %306 = dma.done.wait [#allocation7], 1024  }
  0x46   :  { %307 = vsyncadd [#allocation7], 4294966272 }
  0x47   :  { %308 = dma.done.wait [#allocation10], 128  }
  0x48   :  { %309 = vsyncadd [#allocation10], 4294967168  ;;  %v316_v0 = vmov 0.0   ;;  %v75_v1 = vld [vmem:[#allocation3] sm:$0x3f]  ;;  %v317_v30 = vmov 0  }
  0x49   :  { %71 = vst [vmem:[#allocation2] sm:$0x3f] %v316_v0  ;;  %72 = vst [vmem:[#allocation2 + $0x8] sm:$0x3f] %v316_v0  ;;  %v76_v2 = vld [vmem:[#allocation3 + $0x8] sm:$0x3f] }
  0x4a   :  { %73 = vst [vmem:[#allocation2 + $0x10] sm:$0x3f] %v316_v0  ;;  %74 = vst [vmem:[#allocation2 + $0x18] sm:$0x3f] %v316_v0  ;;  %v77_v3 = vld [vmem:[#allocation3 + $0x10] sm:$0x3f] }
  0x4b   :  { %v78_v4 = vld [vmem:[#allocation3 + $0x18] sm:$0x3f]  ;;  %v79_v5 = vld [vmem:[#allocation6] sm:$0x3f]  ;;  %v80_v6 = vld [vmem:[#allocation6 + $0x8] sm:$0x3f] }
  0x4c   :  { %v81_v7 = vld [vmem:[#allocation6 + $0x10] sm:$0x3f]  ;;  %v82_v8 = vld [vmem:[#allocation6 + $0x18] sm:$0x3f]  ;;  %v83_v9 = vld [vmem:[#allocation8] sm:$0x3f] }
  0x4d   :  { %v84_v10 = vld [vmem:[#allocation8 + $0x8] sm:$0x3f]  ;;  %v85_v11 = vld [vmem:[#allocation8 + $0x10] sm:$0x3f]  ;;  %v86_v12 = vld [vmem:[#allocation8 + $0x18] sm:$0x3f]  ;;  %v89_v13 = vsub.f32 %v75_v1, %v83_v9  ;;  %v93_v14 = vsub.f32 %v79_v5, %v83_v9 }
  0x4e   :  { %v87_v15 = vld [vmem:[#allocation9] sm:$0xff]  ;;  %v90_v16 = vsub.f32 %v76_v2, %v84_v10  ;;  %v91_v17 = vsub.f32 %v77_v3, %v85_v11  ;;  %v92_v18 = vsub.f32 %v78_v4, %v86_v12  ;;  %v94_v19 = vsub.f32 %v80_v6, %v84_v10  ;;  %s318_s3 = smov [#allocation11]  }
  0x4f   :  { %vm88_vm0 = vnez %v87_v15  ;;  %v95_v20 = vsub.f32 %v81_v7, %v85_v11  ;;  %v96_v21 = vsub.f32 %v82_v8, %v86_v12  ;;  %v97_v22 = vmul.f32 %v89_v13, %v89_v13  ;;  %s174_s8 = sshll.u32 %s318_s3, 4  ;;  %s175_s8 = int_to_ptr.vmem [resolvable:$true] %s174_s8 }
  0x50   :  { %v98_v23 = vmul.f32 %v90_v16, %v90_v16  ;;  %v99_v24 = vmul.f32 %v91_v17, %v91_v17  ;;  %v100_v25 = vmul.f32 %v92_v18, %v92_v18  ;;  %v101_v26 = vmul.f32 %v93_v14, %v93_v14  ;;  %v122_v40 = vld [vmem:[#allocation2] sm:$0x3f]  ;;  %v123_v41 = vld [vmem:[#allocation2 + $0x8] sm:$0x3f]  ;;  %s282_s10 = scalar_lea.vmem %s175_s8, 128  ;;  %p287_p5 = scmp.lt.s32.totalorder %s175_s8, %s175_s8 }
  0x51   :  { %v102_v27 = vmul.f32 %v94_v19, %v94_v19  ;;  %v103_v28 = vmul.f32 %v95_v20, %v95_v20  ;;  %v104_v29 = vmul.f32 %v96_v21, %v96_v21  ;;  %v109_v31 = vsel %vm88_vm0, 16843009, %v317_v30  ;;  %v124_v42 = vld [vmem:[#allocation2 + $0x10] sm:$0x3f]  ;;  %v125_v43 = vld [vmem:[#allocation2 + $0x18] sm:$0x3f]  ;;  %p283_p4 = scmp.ne.s32.totalorder %s175_s8, %s282_s10  ;;  %p288_p6 = scmp.lt.s32.totalorder %s282_s10, %s282_s10 }
  0x52   :  { %v105_v32 = vadd.f32 %v101_v26, %v97_v22  ;;  %v110_v33 = vunpack.c.0.s8 %v109_v31  ;;  %v111_v34 = vunpack.c.1.s8 %v109_v31  ;;  %v112_v35 = vunpack.c.2.s8 %v109_v31 }
  0x53   :  { %v106_v36 = vadd.f32 %v102_v27, %v98_v23  ;;  %v107_v37 = vadd.f32 %v103_v28, %v99_v24  ;;  %v108_v38 = vadd.f32 %v104_v29, %v100_v25  ;;  %v113_v39 = vunpack.c.3.s8 %v109_v31  ;;  %p289_p7 = por %p288_p6, %p287_p5 }
  0x54   :  { %vm114_vm1 = vcmp.ne.s32.totalorder %v110_v33, 0  ;;  %vm115_vm2 = vcmp.ne.s32.totalorder %v111_v34, 0  ;;  %vm116_vm3 = vcmp.ne.s32.totalorder %v112_v35, 0  ;;  %vm141_vm5 = vcmask 1045504  }
  0x55   :  { %vm117_vm4 = vcmp.ne.s32.totalorder %v113_v39, 0  ;;  %v118_v44 = vsel %vm114_vm1, %v105_v32, 0.0  ;;  %v119_v45 = vsel %vm115_vm2, %v106_v36, 0.0  ;;  %v120_v46 = vsel %vm116_vm3, %v107_v37, 0.0  ;;  %p290_p8 = pnand %p289_p7, %p283_p4 }
  0x56   :  { %v121_v47 = vsel %vm117_vm4, %v108_v38, 0.0  ;;  %v126_v48 = vadd.f32 %v122_v40, %v118_v44  ;;  %v127_v49 = vadd.f32 %v123_v41, %v119_v45  ;;  %v128_v50 = vadd.f32 %v124_v42, %v120_v46 }
  0x57   :  { %v129_v51 = vadd.f32 %v125_v43, %v121_v47  ;;  %v158_v6 = vlaneseq }
  0x58   :  { %130 = vst [vmem:[#allocation2] sm:$0x3f] %v126_v48  ;;  %131 = vst [vmem:[#allocation2 + $0x8] sm:$0x3f] %v127_v49 }
  0x59   :  { %132 = vst [vmem:[#allocation2 + $0x10] sm:$0x3f] %v128_v50  ;;  %133 = vst [vmem:[#allocation2 + $0x18] sm:$0x3f] %v129_v51  ;;  %v159_v7 = vshrl.u32 %v158_v6, 7  ;;  %v161_v8 = vand.u32 127, %v158_v6 }
  0x5b   :  { %vm162_vm6 = vcmp.eq.s32.totalorder %v159_v7, 0  ;;  %vm163_vm7 = vcmp.eq.s32.totalorder %v161_v8, 0 }
  0x5c   :  { %vm164_vm8 = vmand %vm162_vm6, %vm163_vm7 }
  0x5f   :  { %v137_v52 = vld [vmem:[#allocation2] sm:$0x3f]  ;;  %v138_v53 = vld [vmem:[#allocation2 + $0x8] sm:$0x3f] }
  0x60   :  { %v139_v54 = vld [vmem:[#allocation2 + $0x10] sm:$0x3f]  ;;  %v140_v55 = vld [vmem:[#allocation2 + $0x18] sm:$0x3f]  ;;  %v142_v56 = vsel %vm141_vm5, %v137_v52, 0.0  ;;  %v143_v57 = vsel %vm141_vm5, %v138_v53, 0.0 }
  0x61   :  { %v145_v58 = vsel %vm141_vm5, %v139_v54, 0.0  ;;  %v144_v59 = vadd.f32 %v143_v57, %v142_v56  ;;  %v147_v60 = vsel %vm141_vm5, %v140_v55, 0.0 }
  0x63   :  { %v146_v61 = vadd.f32 %v145_v58, %v144_v59 }
  0x65   :  { %v148_v62 = vadd.f32 %v147_v60, %v146_v61 }
  0x67   :  { %149 = vadd.xlane.f32.xlu0 %v148_v62 }
  0xf4   :  { %v150_v63 = vpop.xlane.xlu0 %149 }
  0xf5   :  { %v151_v0 = vrot.slane %v150_v63, 4 }
  0xf7   :  { %v152_v1 = vadd.f32 %v151_v0, %v150_v63 }
  0xf9   :  { %v153_v2 = vrot.slane %v152_v1, 2 }
  0xfb   :  { %v154_v3 = vadd.f32 %v153_v2, %v152_v1 }
  0xfd   :  { %v155_v4 = vrot.slane %v154_v3, 1 }
  0xff   :  { %v156_v5 = vadd.f32 %v155_v4, %v154_v3 }
 0x101   :  { %185 = vpush %v156_v5 }
 0x132   :  { %s186_s9 = spop %185 }
 0x133   :  { %v165_v9 = vstv %s186_s9 }
 0x134   :  { %v166_v10 = vsel %vm164_vm8, %v165_v9, 0.0 }
 0x135   :  { %167 = vst [vmem:[#allocation11] sm:$0xff] %v166_v10 }
 0x136   :  { %293 = shalt.err (!%p290_p8)
}
 0x137   :  { %s294_s12 = scalar_lea.hbm %s408_s4, 128 }
 0x138   :  { %p295_p9 = scmp.ne.s32.totalorder %s408_s4, %s294_s12  ;;  %p298_p10 = scmp.lt.u32.totalorder %s294_s12, %s408_s4 }
 0x13a   :  { %p300_p11 = pnand %p298_p10, %p295_p9 }
 0x13c   :  { %303 = shalt.err (!%p300_p11)
}
 0x13d   :  { %177 = dma.vmem_to_hbm [thread:$0]  %s175_s8, 128, %s408_s4, [#allocation5]  }
 0x13e   :  { %310 = dma.done.wait [#allocation5], 128  }
 0x13f   :  { %311 = vsyncadd [#allocation5], 4294967168 }
 0x140   :  { %181 = vsyncpa [#allocation4], 1 }
 0x141   :  { %182 = vsyncpa [#allocation7], 1 }
 0x142   :  { %183 = vsyncpa [#allocation10], 1 }
 0x143   :  { %184 = vsyncpa [#allocation5], 1 }

</bundles_post_ra>
